<compile_context>
chip_gen: v6e
topology: v6e:2x2x1
jax: 0.10.0
libtpu: 0.0.40
codegen_flags: <defaults>
</compile_context>

<pallas_src>
import functools

import jax
import jax.numpy as jnp
from jax.experimental import pallas as pl
from jax.experimental.pallas import tpu as pltpu

IN_DIM = 231          # flattened observation dim of SACNet
IN_PAD = 256          # kernel-side feature width (multiple of 128)
HID = 256
OUT_DIM = 2           # mu head width (== HBM output width)
OUT_PAD = 128         # lane-dense head width used inside the kernel
DEFAULT_TB = 2048     # max batch tile; ~17 MiB VMEM footprint (fits v7x 64 MiB/core)


def _round_up(n, m):
    return ((n + m - 1) // m) * m


def sacnet_kernel(x_ref, w1_ref, b1_ref, w2_ref, b2_ref, wmu_ref, bmu_ref,
                  out_ref):
    cdt = w1_ref.dtype                                     # compute dtype

    # x block is (TB, 256) but only the first 231 lanes were DMA'd from HBM;
    # explicitly zero the overhang lanes (never rely on stale VMEM), then cast
    # to the matmul compute dtype.  This is the fused pad + cast.
    x_raw = x_ref[...]                                     # (TB, 256) f32
    lane = jax.lax.broadcasted_iota(jnp.int32, x_raw.shape, 1)
    x = jnp.where(lane < IN_DIM, x_raw, 0.0).astype(cdt)

    h1 = jnp.dot(x, w1_ref[...], preferred_element_type=jnp.float32)
    h1 = jnp.maximum(h1 + b1_ref[...], 0.0).astype(cdt)    # bias + ReLU in f32

    h2 = jnp.dot(h1, w2_ref[...], preferred_element_type=jnp.float32)
    h2 = jnp.maximum(h2 + b2_ref[...], 0.0).astype(cdt)

    mean = jnp.dot(h2, wmu_ref[...], preferred_element_type=jnp.float32)
    mean = mean + bmu_ref[...]                             # (TB, 128); lanes 2.. are zero

    # Lane-dense 128-wide store into the VMEM block; the pipeline DMA only
    # writes the 2 in-bounds output lanes (and in-bounds rows) back to HBM.
    out_ref[...] = mean.astype(out_ref.dtype)


@functools.partial(jax.jit, static_argnames=("compute_dtype", "tb"))
def sacnet_forward(x, params, *, compute_dtype=jnp.bfloat16, tb=DEFAULT_TB):
    """SACNet forward. Returns the (B, 2) f32 `mean` (mu head)."""
    w1, b1, w2, b2, wmu, bmu = params   # padded params from init_params

    b = x.shape[0]
    x2d = x.reshape(b, -1)
    assert x2d.shape[1] == IN_DIM, f"expected flattened dim {IN_DIM}"

    # Batch tile: >= 2 grid steps when b > 8 (so v7x can shard the batch axis
    # across both TensorCores), multiple of 8 sublanes, capped at `tb`.
    tb_eff = _round_up(max(8, min(tb, (b + 1) // 2)), 8)
    grid = (pl.cdiv(b, tb_eff),)

    # Cast the (tiny, ~0.4 MiB total) weights to the compute dtype; unlike the
    # old full-batch x cast this is negligible HBM traffic.
    w1c = w1.astype(compute_dtype)
    w2c = w2.astype(compute_dtype)
    wmuc = wmu.astype(compute_dtype)

    # Weights/biases: full-array blocks with constant index_map -> fetched
    # once and VMEM-resident across all grid steps.
    def resident(shape):
        return pl.BlockSpec(shape, lambda i: (0, 0))

    out = pl.pallas_call(
        sacnet_kernel,
        out_shape=jax.ShapeDtypeStruct((b, OUT_DIM), jnp.float32),
        grid=grid,
        in_specs=[
            # Raw f32 x tile; block is 256 lanes wide while only 231 exist in
            # HBM -> the pipeline clamps the DMA, kernel zeroes the overhang.
            pl.BlockSpec((tb_eff, IN_PAD), lambda i: (i, 0)),
            resident((IN_PAD, HID)),                        # w1 (zero-padded rows)
            resident((1, HID)),                             # b1
            resident((HID, HID)),                           # w2
            resident((1, HID)),                             # b2
            resident((HID, OUT_PAD)),                       # wmu (lane-padded)
            resident((1, OUT_PAD)),                         # bmu (lane-padded)
        ],
        # 128-lane block over the (b, 2) output: the in-kernel store stays
        # lane-dense, HBM writeback is only 8 B/row.
        out_specs=pl.BlockSpec((tb_eff, OUT_PAD), lambda i: (i, 0)),
        compiler_params=pltpu.CompilerParams(
            dimension_semantics=("parallel",),
            vmem_limit_bytes=64 * 1024 * 1024,
        ),
    )(x2d, w1c, b1, w2c, b2, wmuc, bmu)

    return out


def init_params(key):
    """nn.Linear-style init U(-1/sqrt(fan_in), +), stored pre-transposed as
    (in, out) and zero-padded to TPU-friendly shapes:
      w1: (256, 256) with rows 231..255 zero
      wmu: (256, 128) with cols 2..127 zero, bmu: (1, 128) with cols 2..127 zero
    """
    def linear(key, fan_in, fan_out):
        kw, kb = jax.random.split(key)
        bound = 1.0 / jnp.sqrt(fan_in)
        w = jax.random.uniform(kw, (fan_in, fan_out), jnp.float32,
                               minval=-bound, maxval=bound)
        bias = jax.random.uniform(kb, (1, fan_out), jnp.float32,
                                  minval=-bound, maxval=bound)
        return w, bias

    k1, k2, k3 = jax.random.split(key, 3)
    w1, b1 = linear(k1, IN_DIM, HID)
    w2, b2 = linear(k2, HID, HID)
    wmu, bmu = linear(k3, HID, OUT_DIM)

    # Pad to TPU-friendly shapes (zeros do not change the math).
    w1 = jnp.pad(w1, ((0, IN_PAD - IN_DIM), (0, 0)))
    wmu = jnp.pad(wmu, ((0, 0), (0, OUT_PAD - OUT_DIM)))
    bmu = jnp.pad(bmu, ((0, 0), (0, OUT_PAD - OUT_DIM)))
    return (w1, b1, w2, b2, wmu, bmu)


def reference_forward(x, params):
    """Plain-JAX f32 reference using the *logical* (unpadded) weights."""
    w1, b1, w2, b2, wmu, bmu = params
    w1 = w1[:IN_DIM, :]
    wmu = wmu[:, :OUT_DIM]
    bmu = bmu[:, :OUT_DIM]
    x2d = x.reshape(x.shape[0], -1)
    h1 = jnp.maximum(x2d @ w1 + b1, 0.0)
    h2 = jnp.maximum(h1 @ w2 + b2, 0.0)
    return h2 @ wmu + bmu


if __name__ == "__main__":
    key = jax.random.PRNGKey(0)
    kx, kp = jax.random.split(key)

    params = init_params(kp)

    # Small test: batch=2, flattened observation of 231 features (single tile,
    # ragged rows AND ragged lanes exercised).
    batch = 2
    x = jax.random.normal(kx, (batch, IN_DIM), jnp.float32)
    ref = reference_forward(x, params)

    # f32 compute path: should match the reference tightly.
    out_f32 = jax.block_until_ready(
        sacnet_forward(x, params, compute_dtype=jnp.float32))
    assert out_f32.shape == (batch, OUT_DIM)
    assert jnp.allclose(out_f32, ref, atol=1e-4, rtol=1e-4), "f32 mismatch"

    # bf16 compute path (default, fast path): looser tolerance vs f32 ref.
    out_bf16 = jax.block_until_ready(sacnet_forward(x, params))
    assert out_bf16.shape == (batch, OUT_DIM)
    assert jnp.allclose(out_bf16, ref, atol=5e-2, rtol=5e-2), "bf16 mismatch"

    # Multi-tile grid with a ragged final tile (no batch padding in wrapper).
    batch2 = 37
    x2 = jax.random.normal(kx, (batch2, IN_DIM), jnp.float32)
    ref2 = reference_forward(x2, params)
    out2 = jax.block_until_ready(
        sacnet_forward(x2, params, compute_dtype=jnp.float32, tb=16))
    assert out2.shape == (batch2, OUT_DIM)
    assert jnp.allclose(out2, ref2, atol=1e-4, rtol=1e-4), "tiled mismatch"

    # Default tile selection: ceil(b/2) -> grid of 2 (megacore split path).
    batch3 = 300
    x3 = jax.random.normal(kx, (batch3, IN_DIM), jnp.float32)
    ref3 = reference_forward(x3, params)
    out3 = jax.block_until_ready(
        sacnet_forward(x3, params, compute_dtype=jnp.float32))
    assert out3.shape == (batch3, OUT_DIM)
    assert jnp.allclose(out3, ref3, atol=1e-4, rtol=1e-4), "split-grid mismatch"

    print("KERNEL_OK")
</pallas_src>

<mosaic_0001>
module attributes {stable_mosaic.version = 11 : i64} {
  func.func @sacnet_kernel(%arg0: i32, %arg1: memref<8x256xf32, #tpu.memory_space<vmem>>, %arg2: memref<256x256xf32, #tpu.memory_space<vmem>>, %arg3: memref<1x256xf32, #tpu.memory_space<vmem>>, %arg4: memref<256x256xf32, #tpu.memory_space<vmem>>, %arg5: memref<1x256xf32, #tpu.memory_space<vmem>>, %arg6: memref<256x128xf32, #tpu.memory_space<vmem>>, %arg7: memref<1x128xf32, #tpu.memory_space<vmem>>, %arg8: memref<8x128xf32, #tpu.memory_space<vmem>>) attributes {dimension_semantics = [#tpu.dimension_semantics<parallel>], iteration_bounds = array<i64: 1>, scalar_prefetch = 0 : i64, scratch_operands = 0 : i64, tpu.core_type = #tpu.core_type<tc>, window_params = [{transform_indices = @transform_0, window_bounds = array<i64: 8, 256>}, {pipeline_mode = #tpu.pipeline_mode<synchronous>, transform_indices = @transform_1, window_bounds = array<i64: 256, 256>}, {pipeline_mode = #tpu.pipeline_mode<synchronous>, transform_indices = @transform_2, window_bounds = array<i64: 1, 256>}, {pipeline_mode = #tpu.pipeline_mode<synchronous>, transform_indices = @transform_3, window_bounds = array<i64: 256, 256>}, {pipeline_mode = #tpu.pipeline_mode<synchronous>, transform_indices = @transform_4, window_bounds = array<i64: 1, 256>}, {pipeline_mode = #tpu.pipeline_mode<synchronous>, transform_indices = @transform_5, window_bounds = array<i64: 256, 128>}, {pipeline_mode = #tpu.pipeline_mode<synchronous>, transform_indices = @transform_6, window_bounds = array<i64: 1, 128>}, {transform_indices = @transform_7, window_bounds = array<i64: 8, 128>}]} {
    %c0 = arith.constant 0 : index
    %c0_0 = arith.constant 0 : index
    %0 = vector.load %arg1[%c0, %c0_0] : memref<8x256xf32, #tpu.memory_space<vmem>>, vector<8x256xf32>
    %1 = tpu.iota {dimensions = array<i32: 1>} : vector<8x256xi32>
    %c231_i32 = arith.constant 231 : i32
    %2 = vector.broadcast %c231_i32 : i32 to vector<8x256xi32>
    %3 = arith.cmpi slt, %1, %2 : vector<8x256xi32>
    %cst = arith.constant 0.000000e+00 : f32
    %4 = vector.broadcast %cst : f32 to vector<8x256xf32>
    %5 = arith.select %3, %0, %4 : vector<8x256xi1>, vector<8x256xf32>
    %c0_1 = arith.constant 0 : index
    %c0_2 = arith.constant 0 : index
    %6 = vector.load %arg2[%c0_1, %c0_2] : memref<256x256xf32, #tpu.memory_space<vmem>>, vector<256x256xf32>
    %cst_3 = arith.constant dense<0.000000e+00> : vector<8x256xf32>
    %7 = tpu.matmul %5, %6, %cst_3 {dimension_numbers = #tpu.dot_dimension_numbers<[1], [0], [0], [1], [0, 0, 1, 1], [], []>} : vector<8x256xf32>, vector<256x256xf32>, vector<8x256xf32> -> vector<8x256xf32>
    %c0_4 = arith.constant 0 : index
    %c0_5 = arith.constant 0 : index
    %8 = vector.load %arg3[%c0_4, %c0_5] : memref<1x256xf32, #tpu.memory_space<vmem>>, vector<1x256xf32>
    %9 = vector.broadcast %8 : vector<1x256xf32> to vector<8x256xf32>
    %10 = arith.addf %7, %9 : vector<8x256xf32>
    %cst_6 = arith.constant 0.000000e+00 : f32
    %11 = vector.broadcast %cst_6 : f32 to vector<8x256xf32>
    %12 = arith.maximumf %10, %11 : vector<8x256xf32>
    %c0_7 = arith.constant 0 : index
    %c0_8 = arith.constant 0 : index
    %13 = vector.load %arg4[%c0_7, %c0_8] : memref<256x256xf32, #tpu.memory_space<vmem>>, vector<256x256xf32>
    %cst_9 = arith.constant dense<0.000000e+00> : vector<8x256xf32>
    %14 = tpu.matmul %12, %13, %cst_9 {dimension_numbers = #tpu.dot_dimension_numbers<[1], [0], [0], [1], [0, 0, 1, 1], [], []>} : vector<8x256xf32>, vector<256x256xf32>, vector<8x256xf32> -> vector<8x256xf32>
    %c0_10 = arith.constant 0 : index
    %c0_11 = arith.constant 0 : index
    %15 = vector.load %arg5[%c0_10, %c0_11] : memref<1x256xf32, #tpu.memory_space<vmem>>, vector<1x256xf32>
    %16 = vector.broadcast %15 : vector<1x256xf32> to vector<8x256xf32>
    %17 = arith.addf %14, %16 : vector<8x256xf32>
    %cst_12 = arith.constant 0.000000e+00 : f32
    %18 = vector.broadcast %cst_12 : f32 to vector<8x256xf32>
    %19 = arith.maximumf %17, %18 : vector<8x256xf32>
    %c0_13 = arith.constant 0 : index
    %c0_14 = arith.constant 0 : index
    %20 = vector.load %arg6[%c0_13, %c0_14] : memref<256x128xf32, #tpu.memory_space<vmem>>, vector<256x128xf32>
    %cst_15 = arith.constant dense<0.000000e+00> : vector<8x128xf32>
    %21 = tpu.matmul %19, %20, %cst_15 {dimension_numbers = #tpu.dot_dimension_numbers<[1], [0], [0], [1], [0, 0, 1, 1], [], []>} : vector<8x256xf32>, vector<256x128xf32>, vector<8x128xf32> -> vector<8x128xf32>
    %c0_16 = arith.constant 0 : index
    %c0_17 = arith.constant 0 : index
    %22 = vector.load %arg7[%c0_16, %c0_17] : memref<1x128xf32, #tpu.memory_space<vmem>>, vector<1x128xf32>
    %23 = vector.broadcast %22 : vector<1x128xf32> to vector<8x128xf32>
    %24 = arith.addf %21, %23 : vector<8x128xf32>
    %c0_18 = arith.constant 0 : index
    %c0_19 = arith.constant 0 : index
    %25 = vector.load %arg8[%c0_18, %c0_19] : memref<8x128xf32, #tpu.memory_space<vmem>>, vector<8x128xf32>
    tpu.vector_store %arg8[%c0_18, %c0_19], %24 {strides = array<i32>} : memref<8x128xf32, #tpu.memory_space<vmem>>, vector<8x128xf32>,
    return
  }
  func.func @transform_0(%arg0: i32) -> (i32, i32) {
    %c0_i32 = arith.constant 0 : i32
    %c0_i32_0 = arith.constant 0 : i32
    return %arg0, %c0_i32 : i32, i32
  }
  func.func @transform_1(%arg0: i32) -> (i32, i32) {
    %c0_i32 = arith.constant 0 : i32
    %c0_i32_0 = arith.constant 0 : i32
    %c0_i32_1 = arith.constant 0 : i32
    return %c0_i32, %c0_i32_0 : i32, i32
  }
  func.func @transform_2(%arg0: i32) -> (i32, i32) {
    %c0_i32 = arith.constant 0 : i32
    %c0_i32_0 = arith.constant 0 : i32
    %c0_i32_1 = arith.constant 0 : i32
    return %c0_i32, %c0_i32_0 : i32, i32
  }
  func.func @transform_3(%arg0: i32) -> (i32, i32) {
    %c0_i32 = arith.constant 0 : i32
    %c0_i32_0 = arith.constant 0 : i32
    %c0_i32_1 = arith.constant 0 : i32
    return %c0_i32, %c0_i32_0 : i32, i32
  }
  func.func @transform_4(%arg0: i32) -> (i32, i32) {
    %c0_i32 = arith.constant 0 : i32
    %c0_i32_0 = arith.constant 0 : i32
    %c0_i32_1 = arith.constant 0 : i32
    return %c0_i32, %c0_i32_0 : i32, i32
  }
  func.func @transform_5(%arg0: i32) -> (i32, i32) {
    %c0_i32 = arith.constant 0 : i32
    %c0_i32_0 = arith.constant 0 : i32
    %c0_i32_1 = arith.constant 0 : i32
    return %c0_i32, %c0_i32_0 : i32, i32
  }
  func.func @transform_6(%arg0: i32) -> (i32, i32) {
    %c0_i32 = arith.constant 0 : i32
    %c0_i32_0 = arith.constant 0 : i32
    %c0_i32_1 = arith.constant 0 : i32
    return %c0_i32, %c0_i32_0 : i32, i32
  }
  func.func @transform_7(%arg0: i32) -> (i32, i32) {
    %c0_i32 = arith.constant 0 : i32
    %c0_i32_0 = arith.constant 0 : i32
    return %arg0, %c0_i32 : i32, i32
  }
}

</mosaic_0001>

<bundles_post_ra>
// kernel: sacnet_forward.1
= control target key start
LH: loop header
LB: loop body
LE: loop exit
PB: predicated region body
PF: predicated region fallthrough
CT: control target
= control target key end

     0   :  { %12 = vsyncpa [#allocation3], 0  ;;  %s802_s0 = inlined_call_operand.hbm [shape: f32[2,231], index: 0, kind: input, shape index: {}]   ;;  %s803_s1 = inlined_call_operand.hbm [shape: f32[256,256], index: 1, kind: input, shape index: {}]   ;;  %s804_s2 = inlined_call_operand.vmem [shape: f32[1,256], index: 2, kind: input, shape index: {}]   ;;  %s805_s3 = inlined_call_operand.hbm [shape: f32[256,256], index: 3, kind: input, shape index: {}]   ;;  %s806_s4 = inlined_call_operand.vmem [shape: f32[1,256], index: 4, kind: input, shape index: {}]   ;;  %s807_s5 = inlined_call_operand.hbm [shape: f32[256,128], index: 5, kind: input, shape index: {}]   ;;  %s808_s6 = inlined_call_operand.vmem [shape: f32[1,128], index: 6, kind: input, shape index: {}]   ;;  %s809_s7 = inlined_call_operand.hbm [shape: f32[2,2], index: 7, kind: output, shape index: {}]  }
   0x1   :  { %13 = vsyncpa [#allocation6], 0 }
   0x2   :  { %14 = vsyncpa [#allocation9], 0 }
   0x3   :  { %15 = vsyncpa [#allocation4], 0 }
   0x4   :  { %20 = vsyncadd [#allocation3], 192  ;;  %s707_s24 = smov [#allocation5]  }
   0x5   :  { %s33_s25 = sshll.u32 %s707_s24, 4  ;;  %s34_s25 = int_to_ptr.vmem [resolvable:$true] %s33_s25 }
   0x6   :  { %s607_s26 = scalar_lea.vmem %s34_s25, 8192  ;;  %p612_p1 = scmp.lt.s32.totalorder %s34_s25, %s34_s25 }
   0x7   :  { %p608_p0 = scmp.ne.s32.totalorder %s34_s25, %s607_s26  ;;  %p613_p2 = scmp.lt.s32.totalorder %s607_s26, %s607_s26 }
   0x9   :  { %p614_p3 = por %p613_p2, %p612_p1 }
   0xb   :  { %p615_p4 = pnand %p614_p3, %p608_p0 }
   0xd   :  { %618 = shalt.err (!%p615_p4)
}
   0xe   :  { %s708_s27 = smov 256   ;;  %s709_s28 = smov 16  }
   0xf   :  { %39 = dma.hbm_to_vmem [thread:$0]  %s803_s1, 8192, %s34_s25, [#allocation6], %s708_s27, %s708_s27, %s709_s28  }
  0x10   :  { %s710_s8 = smov [#allocation2]  }
  0x11   :  { %s21_s9 = sshll.u32 %s710_s8, 4  ;;  %s22_s9 = int_to_ptr.vmem [resolvable:$true] %s21_s9 }
  0x12   :  { %s627_s10 = scalar_lea.vmem %s22_s9, 64  ;;  %s631_s11 = scalar_lea.vmem %s22_s9, 256 }
  0x13   :  { %p628_p5 = scmp.ne.s32.totalorder %s22_s9, %s627_s10  ;;  %p632_p6 = scmp.lt.s32.totalorder %s22_s9, %s22_s9 }
  0x14   :  { %p633_p7 = scmp.lt.s32.totalorder %s631_s11, %s627_s10 }
  0x16   :  { %p634_p8 = por %p633_p7, %p632_p6 }
  0x18   :  { %p635_p9 = pnand %p634_p8, %p628_p5 }
  0x1a   :  { %638 = shalt.err (!%p635_p9)
}
  0x1b   :  { %s711_s12 = smov 64   ;;  %s712_s13 = smov 4  }
  0x1c   :  { %27 = dma.hbm_to_vmem [thread:$0]  %s802_s0, 64, %s22_s9, [#allocation3], %s711_s12, %s711_s12, %s712_s13  }
  0x1d   :  { %s713_s16 = smov [#allocation7]   ;;  %s714_s1 = smov [#allocation8]  }
  0x1e   :  { %s47_s17 = sshll.u32 %s713_s16, 4  ;;  %s61_s18 = sshll.u32 %s714_s1, 4  ;;  %s48_s17 = int_to_ptr.vmem [resolvable:$true] %s47_s17  ;;  %s62_s18 = int_to_ptr.vmem [resolvable:$true] %s61_s18 }
  0x1f   :  { %s647_s19 = scalar_lea.vmem %s48_s17, 8192  ;;  %p652_p11 = scmp.lt.s32.totalorder %s48_s17, %s48_s17 }
  0x20   :  { %p648_p10 = scmp.ne.s32.totalorder %s48_s17, %s647_s19  ;;  %p653_p12 = scmp.lt.s32.totalorder %s647_s19, %s647_s19 }
  0x22   :  { %p654_p13 = por %p653_p12, %p652_p11 }
  0x24   :  { %p655_p0 = pnand %p654_p13, %p648_p10 }
  0x26   :  { %658 = shalt.err (!%p655_p0)
}
  0x27   :  { %53 = dma.hbm_to_vmem [thread:$0]  %s805_s3, 8192, %s48_s17, [#allocation6], %s708_s27, %s708_s27, %s709_s28  }
  0x28   :  { %s667_s0 = scalar_lea.vmem %s62_s18, 4096  ;;  %p672_p2 = scmp.lt.s32.totalorder %s62_s18, %s62_s18 }
  0x29   :  { %p668_p1 = scmp.ne.s32.totalorder %s62_s18, %s667_s0  ;;  %p673_p3 = scmp.lt.s32.totalorder %s667_s0, %s667_s0 }
  0x2b   :  { %p674_p4 = por %p673_p3, %p672_p2 }
  0x2d   :  { %p675_p5 = pnand %p674_p4, %p668_p1 }
  0x2f   :  { %678 = shalt.err (!%p675_p5)
}
  0x30   :  { %s715_s22 = smov 128   ;;  %s716_s23 = smov 8  }
  0x31   :  { %67 = dma.hbm_to_vmem [thread:$0]  %s807_s5, 4096, %s62_s18, [#allocation9], %s715_s22, %s715_s22, %s716_s23  }
  0x32   :  { %699 = dma.done.wait [#allocation3], 256  }
  0x33   :  { %700 = vsyncadd [#allocation3], 4294967040 }
  0x34   :  { %701 = dma.done.wait [#allocation6], 16384  }
  0x35   :  { %702 = vsyncadd [#allocation6], 4294950912 }
  0x36   :  { %703 = dma.done.wait [#allocation9], 4096  }
  0x37   :  { %704 = vsyncadd [#allocation9], 4294963200  ;;  %v148_v0 = vld [vmem:[#allocation5 + $0xf8] sm:$0xff]  ;;  %v147_v1 = vld [vmem:[#allocation5 + $0xf0] sm:$0xff]  ;;  %v86_v15 = vlaneseq }
  0x38   :  { %v146_v2 = vld [vmem:[#allocation5 + $0xe8] sm:$0xff]  ;;  %193 = vmatprep.subr.mxu0 %v148_v0  ;;  %v145_v3 = vld [vmem:[#allocation5 + $0xe0] sm:$0xff]  ;;  %v144_v4 = vld [vmem:[#allocation5 + $0xd8] sm:$0xff] }
  0x39   :  { %194 = vmatpush1.msra.mxu0 %v147_v1  ;;  %v143_v5 = vld [vmem:[#allocation5 + $0xd0] sm:$0xff]  ;;  %v142_v6 = vld [vmem:[#allocation5 + $0xc8] sm:$0xff]  ;;  %v141_v7 = vld [vmem:[#allocation5 + $0xc0] sm:$0xff]  ;;  %v778_v20 = vshrl.u32 %v86_v15, 7  ;;  %v87_v23 = vand.u32 127, %v86_v15 }
  0x3a   :  { %195 = vmatprep.subr.mxu0 %v146_v2  ;;  %v140_v8 = vld [vmem:[#allocation5 + $0xb8] sm:$0xff]  ;;  %v139_v9 = vld [vmem:[#allocation5 + $0xb0] sm:$0xff]  ;;  %v138_v10 = vld [vmem:[#allocation5 + $0xa8] sm:$0xff] }
  0x3b   :  { %196 = vmatpush1.msra.mxu0 %v145_v3  ;;  %v137_v11 = vld [vmem:[#allocation5 + $0xa0] sm:$0xff]  ;;  %v136_v12 = vld [vmem:[#allocation5 + $0x98] sm:$0xff]  ;;  %v135_v13 = vld [vmem:[#allocation5 + $0x90] sm:$0xff]  ;;  %v88_v29 = vadd.s32 128, %v87_v23 }
  0x3c   :  { %197 = vmatprep.subr.mxu0 %v144_v4  ;;  %v134_v14 = vld [vmem:[#allocation5 + $0x88] sm:$0xff]  ;;  %v133_v16 = vld [vmem:[#allocation5 + $0x80] sm:$0xff]  ;;  %v132_v17 = vld [vmem:[#allocation5 + $0x78] sm:$0xff] }
  0x3d   :  { %198 = vmatpush1.msra.mxu0 %v143_v5  ;;  %v131_v18 = vld [vmem:[#allocation5 + $0x70] sm:$0xff]  ;;  %v130_v19 = vld [vmem:[#allocation5 + $0x68] sm:$0xff]  ;;  %v129_v21 = vld [vmem:[#allocation5 + $0x60] sm:$0xff]  ;;  %vm90_vm0 = vcmp.lt.s32.totalorder %v88_v29, 231 }
  0x3e   :  { %199 = vmatprep.subr.mxu0 %v142_v6  ;;  %v128_v22 = vld [vmem:[#allocation5 + $0x58] sm:$0xff]  ;;  %v127_v24 = vld [vmem:[#allocation5 + $0x50] sm:$0xff]  ;;  %v126_v25 = vld [vmem:[#allocation5 + $0x48] sm:$0xff] }
  0x3f   :  { %200 = vmatpush1.msra.mxu0 %v141_v7  ;;  %v125_v26 = vld [vmem:[#allocation5 + $0x40] sm:$0xff]  ;;  %v124_v27 = vld [vmem:[#allocation5 + $0x38] sm:$0xff]  ;;  %v123_v28 = vld [vmem:[#allocation5 + $0x30] sm:$0xff] }
  0x40   :  { %201 = vmatprep.subr.mxu0 %v140_v8  ;;  %v780_v30 = vld.sshfl [vmem:[#allocation2] sm:$0xff pattern:$0x76325410]  ;;  %v782_v31 = vld.sshfl [vmem:[#allocation2 + $0x8] sm:$0xff pattern:$0x76325410] }
  0x41   :  { %202 = vmatpush1.msra.mxu0 %v139_v9  ;;  %v297_v32 = vld [vmem:[#allocation7 + $0xf8] sm:$0xff]  ;;  %v296_v33 = vld [vmem:[#allocation7 + $0xf0] sm:$0xff]  ;;  %v122_v34 = vld [vmem:[#allocation5 + $0x28] sm:$0xff]  ;;  %v112_v41 = vcombine.high %v780_v30, %v782_v31 }
  0x42   :  { %203 = vmatprep.subr.mxu0 %v138_v10  ;;  %342 = vmatprep.subr.mxu1 %v297_v32  ;;  %v295_v35 = vld [vmem:[#allocation7 + $0xe8] sm:$0xff]  ;;  %v294_v36 = vld [vmem:[#allocation7 + $0xe0] sm:$0xff]  ;;  %v293_v38 = vld [vmem:[#allocation7 + $0xd8] sm:$0xff] }
  0x43   :  { %204 = vmatpush1.msra.mxu0 %v137_v11  ;;  %v121_v37 = vld [vmem:[#allocation5 + $0x20] sm:$0xff]  ;;  %343 = vmatpush1.msra.mxu1 %v296_v33  ;;  %v120_v39 = vld [vmem:[#allocation5 + $0x18] sm:$0xff]  ;;  %v119_v40 = vld [vmem:[#allocation5 + $0x10] sm:$0xff] }
  0x44   :  { %205 = vmatprep.subr.mxu0 %v136_v12  ;;  %344 = vmatprep.subr.mxu1 %v295_v35  ;;  %v292_v42 = vld [vmem:[#allocation7 + $0xd0] sm:$0xff]  ;;  %v118_v43 = vld [vmem:[#allocation5 + $0x8] sm:$0xff]  ;;  %v117_v45 = vld [vmem:[#allocation5] sm:$0xff] }
  0x45   :  { %206 = vmatpush1.msra.mxu0 %v135_v13  ;;  %345 = vmatpush1.msra.mxu1 %v294_v36  ;;  %v291_v44 = vld [vmem:[#allocation7 + $0xc8] sm:$0xff]  ;;  %v290_v46 = vld [vmem:[#allocation7 + $0xc0] sm:$0xff]  ;;  %v180_v47 = vld [vmem:[#allocation5 + $0x1f8] sm:$0xff] }
  0x46   :  { %207 = vmatprep.subr.mxu0 %v134_v14  ;;  %346 = vmatprep.subr.mxu1 %v293_v38  ;;  %v289_v48 = vld [vmem:[#allocation7 + $0xb8] sm:$0xff]  ;;  %v179_v49 = vld [vmem:[#allocation5 + $0x1f0] sm:$0xff]  ;;  %v178_v51 = vld [vmem:[#allocation5 + $0x1e8] sm:$0xff] }
  0x47   :  { %208 = vmatpush1.msra.mxu0 %v133_v16  ;;  %544 = vmatprep.mubr.msk.f32.mxu0 %vm90_vm0, %v112_v41  ;;  %v288_v50 = vld [vmem:[#allocation7 + $0xb0] sm:$0xff]  ;;  %v287_v52 = vld [vmem:[#allocation7 + $0xa8] sm:$0xff]  ;;  %v177_v53 = vld [vmem:[#allocation5 + $0x1e0] sm:$0xff] }
  0x48   :  { %209 = vmatprep.subr.mxu0 %v132_v17  ;;  %347 = vmatpush1.msra.mxu1 %v292_v42  ;;  %v286_v54 = vld [vmem:[#allocation7 + $0xa0] sm:$0xff]  ;;  %v176_v55 = vld [vmem:[#allocation5 + $0x1d8] sm:$0xff]  ;;  %v175_v57 = vld [vmem:[#allocation5 + $0x1d0] sm:$0xff] }
  0x49   :  { %210 = vmatpush1.msra.mxu0 %v131_v18  ;;  %348 = vmatprep.subr.mxu1 %v291_v44  ;;  %v285_v56 = vld [vmem:[#allocation7 + $0x98] sm:$0xff]  ;;  %v284_v58 = vld [vmem:[#allocation7 + $0x90] sm:$0xff]  ;;  %v174_v59 = vld [vmem:[#allocation5 + $0x1c8] sm:$0xff] }
  0x4a   :  { %211 = vmatprep.subr.mxu0 %v130_v19  ;;  %349 = vmatpush1.msra.mxu1 %v290_v46  ;;  %v283_v60 = vld [vmem:[#allocation7 + $0x88] sm:$0xff]  ;;  %v173_v61 = vld [vmem:[#allocation5 + $0x1c0] sm:$0xff]  ;;  %v172_v63 = vld [vmem:[#allocation5 + $0x1b8] sm:$0xff] }
  0x4b   :  { %212 = vmatpush1.msra.mxu0 %v129_v21  ;;  %350 = vmatprep.subr.mxu1 %v289_v48  ;;  %v282_v62 = vld [vmem:[#allocation7 + $0x80] sm:$0xff]  ;;  %v281_v0 = vld [vmem:[#allocation7 + $0x78] sm:$0xff]  ;;  %v171_v1 = vld [vmem:[#allocation5 + $0x1b0] sm:$0xff] }
  0x4c   :  { %213 = vmatprep.subr.mxu0 %v128_v22  ;;  %351 = vmatpush1.msra.mxu1 %v288_v50  ;;  %v280_v2 = vld [vmem:[#allocation7 + $0x70] sm:$0xff]  ;;  %v170_v3 = vld [vmem:[#allocation5 + $0x1a8] sm:$0xff]  ;;  %v169_v5 = vld [vmem:[#allocation5 + $0x1a0] sm:$0xff] }
  0x4d   :  { %214 = vmatpush1.msra.mxu0 %v127_v24  ;;  %352 = vmatprep.subr.mxu1 %v287_v52  ;;  %v279_v4 = vld [vmem:[#allocation7 + $0x68] sm:$0xff]  ;;  %v278_v6 = vld [vmem:[#allocation7 + $0x60] sm:$0xff]  ;;  %v168_v7 = vld [vmem:[#allocation5 + $0x198] sm:$0xff] }
  0x4e   :  { %215 = vmatprep.subr.mxu0 %v126_v25  ;;  %353 = vmatpush1.msra.mxu1 %v286_v54  ;;  %v277_v8 = vld [vmem:[#allocation7 + $0x58] sm:$0xff]  ;;  %v167_v9 = vld [vmem:[#allocation5 + $0x190] sm:$0xff]  ;;  %v166_v11 = vld [vmem:[#allocation5 + $0x188] sm:$0xff] }
  0x4f   :  { %216 = vmatpush1.msra.mxu0 %v125_v26  ;;  %354 = vmatprep.subr.mxu1 %v285_v56  ;;  %v276_v10 = vld [vmem:[#allocation7 + $0x50] sm:$0xff]  ;;  %v275_v12 = vld [vmem:[#allocation7 + $0x48] sm:$0xff]  ;;  %v165_v13 = vld [vmem:[#allocation5 + $0x180] sm:$0xff] }
  0x50   :  { %217 = vmatprep.subr.mxu0 %v124_v27  ;;  %355 = vmatpush1.msra.mxu1 %v284_v58  ;;  %v274_v14 = vld [vmem:[#allocation7 + $0x40] sm:$0xff]  ;;  %v164_v15 = vld [vmem:[#allocation5 + $0x178] sm:$0xff]  ;;  %v163_v17 = vld [vmem:[#allocation5 + $0x170] sm:$0xff] }
  0x51   :  { %218 = vmatpush1.msra.mxu0 %v123_v28  ;;  %356 = vmatprep.subr.mxu1 %v283_v60  ;;  %v273_v16 = vld [vmem:[#allocation7 + $0x38] sm:$0xff]  ;;  %v272_v18 = vld [vmem:[#allocation7 + $0x30] sm:$0xff]  ;;  %v162_v19 = vld [vmem:[#allocation5 + $0x168] sm:$0xff] }
  0x52   :  { %219 = vmatprep.subr.mxu0 %v122_v34  ;;  %357 = vmatpush1.msra.mxu1 %v282_v62  ;;  %v271_v21 = vld [vmem:[#allocation7 + $0x28] sm:$0xff]  ;;  %v161_v22 = vld [vmem:[#allocation5 + $0x160] sm:$0xff]  ;;  %v160_v24 = vld [vmem:[#allocation5 + $0x158] sm:$0xff] }
  0x53   :  { %220 = vmatpush1.msra.mxu0 %v121_v37  ;;  %358 = vmatprep.subr.mxu1 %v281_v0  ;;  %v270_v23 = vld [vmem:[#allocation7 + $0x20] sm:$0xff]  ;;  %v269_v25 = vld [vmem:[#allocation7 + $0x18] sm:$0xff]  ;;  %v159_v26 = vld [vmem:[#allocation5 + $0x150] sm:$0xff] }
  0x54   :  { %221 = vmatprep.subr.mxu0 %v120_v39  ;;  %359 = vmatpush1.msra.mxu1 %v280_v2  ;;  %v268_v27 = vld [vmem:[#allocation7 + $0x10] sm:$0xff]  ;;  %v158_v28 = vld [vmem:[#allocation5 + $0x148] sm:$0xff]  ;;  %v157_v32 = vld [vmem:[#allocation5 + $0x140] sm:$0xff] }
  0x55   :  { %222 = vmatpush1.msra.mxu0 %v119_v40  ;;  %360 = vmatprep.subr.mxu1 %v279_v4  ;;  %v267_v29 = vld [vmem:[#allocation7 + $0x8] sm:$0xff]  ;;  %v266_v33 = vld [vmem:[#allocation7] sm:$0xff]  ;;  %v156_v34 = vld [vmem:[#allocation5 + $0x138] sm:$0xff] }
  0x56   :  { %223 = vmatprep.subr.mxu0 %v118_v43  ;;  %361 = vmatpush1.msra.mxu1 %v278_v6  ;;  %v329_v35 = vld [vmem:[#allocation7 + $0x1f8] sm:$0xff]  ;;  %v155_v36 = vld [vmem:[#allocation5 + $0x130] sm:$0xff]  ;;  %v154_v38 = vld [vmem:[#allocation5 + $0x128] sm:$0xff] }
  0x57   :  { %224 = vmatpush1.msra.mxu0 %v117_v45  ;;  %362 = vmatprep.subr.mxu1 %v277_v8  ;;  %v328_v37 = vld [vmem:[#allocation7 + $0x1f0] sm:$0xff]  ;;  %v327_v39 = vld [vmem:[#allocation7 + $0x1e8] sm:$0xff]  ;;  %v153_v40 = vld [vmem:[#allocation5 + $0x120] sm:$0xff] }
  0x58   :  { %225 = vmatprep.subr.mxu0 %v180_v47  ;;  %363 = vmatpush1.msra.mxu1 %v276_v10  ;;  %v326_v41 = vld [vmem:[#allocation7 + $0x1e0] sm:$0xff]  ;;  %v152_v42 = vld [vmem:[#allocation5 + $0x118] sm:$0xff]  ;;  %v151_v44 = vld [vmem:[#allocation5 + $0x110] sm:$0xff] }
  0x59   :  { %226 = vmatpush2.msra.mxu0 %v179_v49  ;;  %364 = vmatprep.subr.mxu1 %v275_v12  ;;  %v325_v43 = vld [vmem:[#allocation7 + $0x1d8] sm:$0xff]  ;;  %v324_v45 = vld [vmem:[#allocation7 + $0x1d0] sm:$0xff]  ;;  %v150_v46 = vld [vmem:[#allocation5 + $0x108] sm:$0xff]  ;;  %v111_v49 = vcombine.low %v780_v30, %v782_v31 }
  0x5a   :  { %227 = vmatprep.subr.mxu0 %v178_v51  ;;  %365 = vmatpush1.msra.mxu1 %v274_v14  ;;  %v323_v47 = vld [vmem:[#allocation7 + $0x1c8] sm:$0xff]  ;;  %v149_v48 = vld [vmem:[#allocation5 + $0x100] sm:$0xff]  ;;  %v321_v51 = vld [vmem:[#allocation7 + $0x1b8] sm:$0xff] }
  0x5b   :  { %228 = vmatpush2.msra.mxu0 %v177_v53  ;;  %366 = vmatprep.subr.mxu1 %v273_v16  ;;  %v322_v50 = vld [vmem:[#allocation7 + $0x1c0] sm:$0xff]  ;;  %v320_v52 = vld [vmem:[#allocation7 + $0x1b0] sm:$0xff]  ;;  %v319_v53 = vld [vmem:[#allocation7 + $0x1a8] sm:$0xff] }
  0x5c   :  { %229 = vmatprep.subr.mxu0 %v176_v55  ;;  %367 = vmatpush1.msra.mxu1 %v272_v18  ;;  %v318_v54 = vld [vmem:[#allocation7 + $0x1a0] sm:$0xff]  ;;  %v317_v55 = vld [vmem:[#allocation7 + $0x198] sm:$0xff]  ;;  %v316_v56 = vld [vmem:[#allocation7 + $0x190] sm:$0xff] }
  0x5d   :  { %230 = vmatpush2.msra.mxu0 %v175_v57  ;;  %368 = vmatprep.subr.mxu1 %v271_v21  ;;  %v315_v30 = vld [vmem:[#allocation7 + $0x188] sm:$0xff]  ;;  %v314_v31 = vld [vmem:[#allocation7 + $0x180] sm:$0xff]  ;;  %v313_v57 = vld [vmem:[#allocation7 + $0x178] sm:$0xff] }
  0x5e   :  { %231 = vmatprep.subr.mxu0 %v174_v59  ;;  %369 = vmatpush1.msra.mxu1 %v270_v23  ;;  %v312_v58 = vld [vmem:[#allocation7 + $0x170] sm:$0xff]  ;;  %v311_v59 = vld [vmem:[#allocation7 + $0x168] sm:$0xff]  ;;  %v310_v60 = vld [vmem:[#allocation7 + $0x160] sm:$0xff] }
  0x5f   :  { %232 = vmatpush2.msra.mxu0 %v173_v61  ;;  %370 = vmatprep.subr.mxu1 %v269_v25  ;;  %v309_v61 = vld [vmem:[#allocation7 + $0x158] sm:$0xff]  ;;  %v308_v62 = vld [vmem:[#allocation7 + $0x150] sm:$0xff]  ;;  %v306_v0 = vld [vmem:[#allocation7 + $0x140] sm:$0xff] }
  0x60   :  { %233 = vmatprep.subr.mxu0 %v172_v63  ;;  %371 = vmatpush1.msra.mxu1 %v268_v27  ;;  %v307_v63 = vld [vmem:[#allocation7 + $0x148] sm:$0xff]  ;;  %v304_v2 = vld [vmem:[#allocation7 + $0x130] sm:$0xff]  ;;  %v302_v4 = vld [vmem:[#allocation7 + $0x120] sm:$0xff] }
  0x61   :  { %234 = vmatpush2.msra.mxu0 %v171_v1  ;;  %372 = vmatprep.subr.mxu1 %v267_v29  ;;  %v305_v1 = vld [vmem:[#allocation7 + $0x138] sm:$0xff]  ;;  %v300_v6 = vld [vmem:[#allocation7 + $0x110] sm:$0xff]  ;;  %v298_v8 = vld [vmem:[#allocation7 + $0x100] sm:$0xff] }
  0x62   :  { %235 = vmatprep.subr.mxu0 %v170_v3  ;;  %373 = vmatpush1.msra.mxu1 %v266_v33  ;;  %v303_v3 = vld [vmem:[#allocation7 + $0x128] sm:$0xff]  ;;  %v430_v10 = vld [vmem:[#allocation8 + $0x78] sm:$0xff]  ;;  %v429_v12 = vld [vmem:[#allocation8 + $0x70] sm:$0xff] }
  0x63   :  { %236 = vmatpush2.msra.mxu0 %v169_v5  ;;  %374 = vmatprep.subr.mxu1 %v329_v35  ;;  %v301_v5 = vld [vmem:[#allocation7 + $0x118] sm:$0xff]  ;;  %v428_v14 = vld [vmem:[#allocation8 + $0x68] sm:$0xff]  ;;  %v427_v16 = vld [vmem:[#allocation8 + $0x60] sm:$0xff] }
  0x64   :  { %237 = vmatprep.subr.mxu0 %v168_v7  ;;  %375 = vmatpush2.msra.mxu1 %v328_v37  ;;  %v299_v7 = vld [vmem:[#allocation7 + $0x108] sm:$0xff]  ;;  %v426_v18 = vld [vmem:[#allocation8 + $0x58] sm:$0xff]  ;;  %v425_v21 = vld [vmem:[#allocation8 + $0x50] sm:$0xff] }
  0x65   :  { %238 = vmatpush2.msra.mxu0 %v167_v9  ;;  %376 = vmatprep.subr.mxu1 %v327_v39  ;;  %v446_v9 = vld [vmem:[#allocation8 + $0xf8] sm:$0xff]  ;;  %v424_v23 = vld [vmem:[#allocation8 + $0x48] sm:$0xff]  ;;  %v423_v25 = vld [vmem:[#allocation8 + $0x40] sm:$0xff] }
  0x66   :  { %239 = vmatprep.subr.mxu0 %v166_v11  ;;  %377 = vmatpush2.msra.mxu1 %v326_v41  ;;  %v445_v11 = vld [vmem:[#allocation8 + $0xf0] sm:$0xff]  ;;  %v422_v27 = vld [vmem:[#allocation8 + $0x38] sm:$0xff]  ;;  %v420_v33 = vld [vmem:[#allocation8 + $0x28] sm:$0xff] }
  0x67   :  { %240 = vmatpush2.msra.mxu0 %v165_v13  ;;  %378 = vmatprep.subr.mxu1 %v325_v43  ;;  %v444_v13 = vld [vmem:[#allocation8 + $0xe8] sm:$0xff]  ;;  %v421_v29 = vld [vmem:[#allocation8 + $0x30] sm:$0xff]  ;;  %v419_v35 = vld [vmem:[#allocation8 + $0x20] sm:$0xff] }
  0x68   :  { %241 = vmatprep.subr.mxu0 %v164_v15  ;;  %379 = vmatpush2.msra.mxu1 %v324_v45  ;;  %v443_v15 = vld [vmem:[#allocation8 + $0xe0] sm:$0xff]  ;;  %v181_v37 = vld [vmem:[%s804_s2] sm:$0x3] }
  0x69   :  { %242 = vmatpush2.msra.mxu0 %v163_v17  ;;  %380 = vmatprep.subr.mxu1 %v323_v47  ;;  %v442_v17 = vld [vmem:[#allocation8 + $0xd8] sm:$0xff] }
  0x6a   :  { %243 = vmatprep.subr.mxu0 %v162_v19  ;;  %381 = vmatpush2.msra.mxu1 %v322_v50  ;;  %v441_v19 = vld [vmem:[#allocation8 + $0xd0] sm:$0xff]  ;;  %v434_v47 = vld [vmem:[#allocation8 + $0x98] sm:$0xff] }
  0x6b   :  { %244 = vmatpush2.msra.mxu0 %v161_v22  ;;  %382 = vmatprep.subr.mxu1 %v321_v51  ;;  %v440_v22 = vld [vmem:[#allocation8 + $0xc8] sm:$0xff]  ;;  %v417_v50 = vld [vmem:[#allocation8 + $0x10] sm:$0xff] }
  0x6c   :  { %245 = vmatprep.subr.mxu0 %v160_v24  ;;  %383 = vmatpush2.msra.mxu1 %v320_v52  ;;  %v439_v24 = vld [vmem:[#allocation8 + $0xc0] sm:$0xff]  ;;  %v432_v51 = vld [vmem:[#allocation8 + $0x88] sm:$0xff] }
  0x6d   :  { %246 = vmatpush2.msra.mxu0 %v159_v26  ;;  %384 = vmatprep.subr.mxu1 %v319_v53  ;;  %v438_v26 = vld [vmem:[#allocation8 + $0xb8] sm:$0xff]  ;;  %v431_v52 = vld [vmem:[#allocation8 + $0x80] sm:$0xff] }
  0x6e   :  { %247 = vmatprep.subr.mxu0 %v158_v28  ;;  %385 = vmatpush2.msra.mxu1 %v318_v54  ;;  %v437_v28 = vld [vmem:[#allocation8 + $0xb0] sm:$0xff]  ;;  %v415_v53 = vld [vmem:[#allocation8] sm:$0xff] }
  0x6f   :  { %248 = vmatpush2.msra.mxu0 %v157_v32  ;;  %386 = vmatprep.subr.mxu1 %v317_v55  ;;  %v436_v32 = vld [vmem:[#allocation8 + $0xa8] sm:$0xff]  ;;  %v330_v54 = vld [vmem:[%s806_s4] sm:$0x3] }
  0x70   :  { %249 = vmatprep.subr.mxu0 %v156_v34  ;;  %387 = vmatpush2.msra.mxu1 %v316_v56  ;;  %v435_v34 = vld [vmem:[#allocation8 + $0xa0] sm:$0xff] }
  0x71   :  { %250 = vmatpush2.msra.mxu0 %v155_v36  ;;  %388 = vmatprep.subr.mxu1 %v315_v30  ;;  %v185_v36 = vsub.s32 0, %v778_v20 }
  0x72   :  { %251 = vmatprep.subr.mxu0 %v154_v38  ;;  %389 = vmatpush2.msra.mxu1 %v314_v31  ;;  %v189_v38 = vsub.s32 1, %v778_v20  ;;  %v416_v20 = vld [vmem:[#allocation8 + $0x8] sm:$0xff] }
  0x73   :  { %252 = vmatpush2.msra.mxu0 %v153_v40  ;;  %390 = vmatprep.subr.mxu1 %v313_v57  ;;  %v186_v39 = vrot.slane %v181_v37, %v185_v36  ;;  %v335_v55 = vrot.slane %v330_v54, %v185_v36 }
  0x74   :  { %253 = vmatprep.subr.mxu0 %v152_v42  ;;  %391 = vmatpush2.msra.mxu1 %v312_v58  ;;  %v190_v40 = vrot.slane %v181_v37, %v189_v38  ;;  %v339_v56 = vrot.slane %v330_v54, %v189_v38 }
  0x75   :  { %254 = vmatpush2.msra.mxu0 %v151_v44  ;;  %392 = vmatprep.subr.mxu1 %v311_v59 }
  0x76   :  { %255 = vmatprep.subr.mxu0 %v150_v46  ;;  %393 = vmatpush2.msra.mxu1 %v310_v60 }
  0x77   :  { %256 = vmatpush2.msra.mxu0 %v149_v48  ;;  %394 = vmatprep.subr.mxu1 %v309_v61  ;;  %v418_v48 = vld [vmem:[#allocation8 + $0x18] sm:$0xff] }
  0x78   :  { %258 = vmatmul.mubr.f32.vlgmr.msra.gmra.mxu0 %v111_v49  ;;  %395 = vmatpush2.msra.mxu1 %v308_v62  ;;  %v433_v49 = vld [vmem:[#allocation8 + $0x90] sm:$0xff] }
  0x79   :  { %396 = vmatprep.subr.mxu1 %v307_v63  ;;  %546 = vmatprep.subr.mxu0 %v446_v9  ;;  %v545_v62 = vld [vmem:[%s808_s6] ss:$0 sm:$0xff] }
  0x7a   :  { %397 = vmatpush2.msra.mxu1 %v306_v0  ;;  %547 = vmatpush3.msra.mxu0 %v430_v10 }
  0x7b   :  { %398 = vmatprep.subr.mxu1 %v305_v1  ;;  %548 = vmatprep.subr.mxu0 %v445_v11 }
  0x7c   :  { %399 = vmatpush2.msra.mxu1 %v304_v2  ;;  %549 = vmatpush3.msra.mxu0 %v429_v12 }
  0x7d   :  { %400 = vmatprep.subr.mxu1 %v303_v3  ;;  %550 = vmatprep.subr.mxu0 %v444_v13 }
  0x7e   :  { %401 = vmatpush2.msra.mxu1 %v302_v4  ;;  %551 = vmatpush3.msra.mxu0 %v428_v14 }
  0x7f   :  { %402 = vmatprep.subr.mxu1 %v301_v5  ;;  %552 = vmatprep.subr.mxu0 %v443_v15 }
  0x80   :  { %403 = vmatpush2.msra.mxu1 %v300_v6  ;;  %553 = vmatpush3.msra.mxu0 %v427_v16 }
  0x81   :  { %404 = vmatprep.subr.mxu1 %v299_v7  ;;  %554 = vmatprep.subr.mxu0 %v442_v17 }
  0x82   :  { %405 = vmatpush2.msra.mxu1 %v298_v8  ;;  %555 = vmatpush3.msra.mxu0 %v426_v18 }
  0x83   :  { %556 = vmatprep.subr.mxu0 %v441_v19 }
  0x84   :  { %557 = vmatpush3.msra.mxu0 %v425_v21 }
  0x85   :  { %558 = vmatprep.subr.mxu0 %v440_v22 }
  0x86   :  { %559 = vmatpush3.msra.mxu0 %v424_v23 }
  0x87   :  { %560 = vmatprep.subr.mxu0 %v439_v24 }
  0x88   :  { %561 = vmatpush3.msra.mxu0 %v423_v25 }
  0x89   :  { %562 = vmatprep.subr.mxu0 %v438_v26 }
  0x8a   :  { %563 = vmatpush3.msra.mxu0 %v422_v27 }
  0x8b   :  { %564 = vmatprep.subr.mxu0 %v437_v28 }
  0x8c   :  { %565 = vmatpush3.msra.mxu0 %v421_v29 }
  0x8d   :  { %566 = vmatprep.subr.mxu0 %v436_v32 }
  0x8e   :  { %567 = vmatpush3.msra.mxu0 %v420_v33 }
  0x8f   :  { %568 = vmatprep.subr.mxu0 %v435_v34 }
  0x90   :  { %569 = vmatpush3.msra.mxu0 %v419_v35 }
  0x91   :  { %570 = vmatprep.subr.mxu0 %v434_v47 }
  0x92   :  { %571 = vmatpush3.msra.mxu0 %v418_v48 }
  0x93   :  { %572 = vmatprep.subr.mxu0 %v433_v49 }
  0x94   :  { %573 = vmatpush3.msra.mxu0 %v417_v50 }
  0x95   :  { %574 = vmatprep.subr.mxu0 %v432_v51 }
  0x96   :  { %575 = vmatpush3.msra.mxu0 %v416_v20 }
  0x97   :  { %576 = vmatprep.subr.mxu0 %v431_v52 }
  0x98   :  { %577 = vmatpush3.msra.mxu0 %v415_v53 }
 0x138   :  { %v259_v41 = vpop.f32.mrf.mxu0 }
 0x139   :  { %v260_v42 = vadd.f32 %v259_v41, %v186_v39 }
 0x13a   :  { %v261_v43 = vpop.f32.mrf.mxu0 }
 0x13b   :  { %v262_v44 = vadd.f32 %v261_v43, %v190_v40  ;;  %v264_v46 = vmax.f32 %v260_v42, 0.0 }
 0x13d   :  { %v265_v45 = vmax.f32 %v262_v44, 0.0 }
 0x13f   :  { %406 = vmatprep.mubr.f32.mxu1 %v265_v45 }
 0x140   :  { %407 = vmatmul.mubr.f32.vlgmr.msra.gmra.mxu1 %v264_v46 }
 0x200   :  { %v408_v30 = vpop.f32.mrf.mxu1 }
 0x201   :  { %v409_v31 = vadd.f32 %v408_v30, %v335_v55 }
 0x202   :  { %v410_v57 = vpop.f32.mrf.mxu1 }
 0x203   :  { %v411_v58 = vadd.f32 %v410_v57, %v339_v56  ;;  %v413_v60 = vmax.f32 %v409_v31, 0.0 }
 0x205   :  { %v414_v59 = vmax.f32 %v411_v58, 0.0 }
 0x207   :  { %518 = vmatprep.mubr.f32.mxu0 %v414_v59 }
 0x208   :  { %519 = vmatmul.mubr.f32.vlgmr.msra.gmra.mxu0 %v413_v60 }
 0x2c8   :  { %v578_v61 = vpop.f32.mrf.mxu0 }
 0x2ca   :  { %v579_v63 = vpop.f32.mrf.mxu0 }
 0x2cb   :  { %v580_v0 = vadd.f32 %v579_v63, %v578_v61 }
 0x2cd   :  { %v521_v1 = vadd.f32 %v580_v0, %v545_v62 }
 0x2cf   :  { %524 = vst [vmem:[#allocation10] sm:$0xff] %v521_v1 }
 0x2d0   :  { %529 = vsyncadd [#allocation4], 96  ;;  %s717_s4 = smov [#allocation10]  }
 0x2d1   :  { %s530_s29 = sshll.u32 %s717_s4, 4  ;;  %s531_s29 = int_to_ptr.vmem [resolvable:$true] %s530_s29 }
 0x2d2   :  { %s679_s30 = scalar_lea.vmem %s531_s29, 32  ;;  %s683_s8 = scalar_lea.vmem %s531_s29, 128 }
 0x2d3   :  { %p680_p6 = scmp.ne.s32.totalorder %s531_s29, %s679_s30  ;;  %p684_p7 = scmp.lt.s32.totalorder %s531_s29, %s531_s29 }
 0x2d4   :  { %p685_p8 = scmp.lt.s32.totalorder %s683_s8, %s679_s30 }
 0x2d6   :  { %p686_p9 = por %p685_p8, %p684_p7 }
 0x2d8   :  { %p687_p10 = pnand %p686_p9, %p680_p6 }
 0x2da   :  { %690 = shalt.err (!%p687_p10)
}
 0x2db   :  { %s718_s9 = smov 32   ;;  %s719_s10 = smov 2  }
 0x2dc   :  { %536 = dma.vmem_to_hbm [thread:$0]  %s531_s29, 32, %s809_s7, [#allocation4], %s718_s9, %s718_s9, %s719_s10  }
 0x2dd   :  { %705 = dma.done.wait [#allocation4], 128  }
 0x2de   :  { %706 = vsyncadd [#allocation4], 4294967168 }
 0x2df   :  { %540 = vsyncpa [#allocation3], 1 }
 0x2e0   :  { %541 = vsyncpa [#allocation6], 1 }
 0x2e1   :  { %542 = vsyncpa [#allocation9], 1 }
 0x2e2   :  { %543 = vsyncpa [#allocation4], 1 }

</bundles_post_ra>
